<compile_context>
chip_gen: v5e
topology: v5e:2x2
jax: 0.10.0
libtpu: 0.0.40
codegen_flags: <defaults>
</compile_context>

<pallas_src>
import math
import functools

import jax
import jax.numpy as jnp
from jax import lax
from jax.experimental import pallas as pl
from jax.experimental.pallas import tpu as pltpu


def _round_up(a, b):
    return (a + b - 1) // b * b


def _norm_linear_kernel(*refs, f_norm, w_norm, has_bias, single_k):
    # Unpack refs: x, w, [inv_x], [inv_w], [bias], out, [acc scratch].
    idx = 0
    x_ref = refs[idx]; idx += 1
    w_ref = refs[idx]; idx += 1
    invx_ref = None
    if f_norm:
        invx_ref = refs[idx]; idx += 1
    invw_ref = None
    if w_norm:
        invw_ref = refs[idx]; idx += 1
    b_ref = None
    if has_bias:
        b_ref = refs[idx]; idx += 1
    o_ref = refs[idx]; idx += 1
    acc_ref = refs[idx] if not single_k else None

    def _scale_and_store(y):
        if f_norm:
            y = y * invx_ref[...]            # (tm, 1) precomputed 1/||x_row||
        if w_norm:
            y = y * invw_ref[...]            # (1, tn) precomputed 1/||w_row||
        if has_bias:
            y = y + b_ref[...].astype(jnp.float32)
        o_ref[...] = y.astype(o_ref.dtype)

    # Raw matmul, contracting last dims (no explicit transpose of W); native
    # (or user-chosen MXU) dtype feeds the MXU, accumulation in f32.
    partial = lax.dot_general(
        x_ref[...], w_ref[...],
        dimension_numbers=(((1,), (1,)), ((), ())),
        preferred_element_type=jnp.float32)

    if single_k:
        _scale_and_store(partial)
    else:
        k = pl.program_id(2)
        nk = pl.num_programs(2)

        @pl.when(k == 0)
        def _init():
            acc_ref[...] = jnp.zeros_like(acc_ref)

        acc_ref[...] += partial

        @pl.when(k == nk - 1)
        def _finalize():
            _scale_and_store(acc_ref[...])


def norm_linear(x, weight, bias, *, F_norm, W_norm, W_softp=False,
                is_detach=False, block_m=None, block_n=None, block_k=None,
                mxu_dtype=None):
    """Pallas implementation of Norm_Linear.forward.

    W_softp and is_detach mirror the PyTorch signature but do not change
    forward values (detach only affects gradients).
    """
    del W_softp, is_detach  # forward-value no-ops
    B, K = x.shape
    N, Kw = weight.shape
    assert K == Kw
    has_bias = bias is not None
    f_norm = bool(F_norm)
    w_norm = bool(W_norm)

    mm_dtype = jnp.dtype(mxu_dtype) if mxu_dtype is not None else None
    x_item = jnp.dtype(mm_dtype if mm_dtype is not None else x.dtype).itemsize
    w_item = jnp.dtype(mm_dtype if mm_dtype is not None else weight.dtype).itemsize
    out_item = jnp.dtype(x.dtype).itemsize

    # ---- Tile selection -----------------------------------------------------
    auto_n = block_n is None
    auto_k = block_k is None
    if block_m is None:
        block_m = 512
    if block_n is None:
        block_n = 512
    if block_k is None:
        block_k = 2048 if x_item <= 2 else 1024

    tm = _round_up(min(block_m, _round_up(B, 8)), 8)
    # Small batch => most MXU rows idle; compensate with fatter N/K tiles so
    # DMA and per-step overhead are amortized (only when caller used defaults).
    if tm < 256:
        if auto_n:
            block_n = max(block_n, 1024)
        if auto_k:
            block_k = max(block_k, 2048 if x_item <= 2 else 1024)
    tn = _round_up(min(block_n, _round_up(N, 128)), 128)
    tk = _round_up(min(block_k, _round_up(K, 128)), 128)

    # VMEM budget from the actual chip (75% of capacity: ~48 MiB on v7x,
    # ~96 MiB on v5e/v6e); shrink tiles if they would not fit.
    try:
        vmem_cap = int(pltpu.get_tpu_info().vmem_capacity_bytes)
    except Exception:
        vmem_cap = 64 * 1024 * 1024  # conservative (v7x) fallback
    budget = (vmem_cap * 3) // 4

    def _footprint(tm_, tn_, tk_):
        fb = 2 * (tm_ * tk_ * x_item + tn_ * tk_ * w_item)   # double-buffered inputs
        fb += 2 * tm_ * tn_ * out_item                        # double-buffered output
        fb += tm_ * tn_ * 4                                   # f32 accumulator
        fb += 2 * (tm_ + 2 * tn_) * 4                         # inv_x / inv_w / bias
        return fb

    while _footprint(tm, tn, tk) > budget:
        if tk > 128:
            tk = max(128, _round_up(tk // 2, 128))
        elif tn > 128:
            tn = max(128, _round_up(tn // 2, 128))
        elif tm > 8:
            tm = max(8, _round_up(tm // 2, 8))
        else:
            break

    Mp, Np, Kp = _round_up(B, tm), _round_up(N, tn), _round_up(K, tk)
    m_tiles, n_tiles, k_tiles = Mp // tm, Np // tn, Kp // tk
    single_k = (k_tiles == 1)

    # ---- Pad (fast path: skip when already aligned) -------------------------
    xp = x if (Mp, Kp) == (B, K) else jnp.pad(x, ((0, Mp - B), (0, Kp - K)))
    wp = weight if (Np, Kp) == (N, K) else jnp.pad(
        weight, ((0, Np - N), (0, Kp - K)))

    # ---- Precompute inverse row norms (tiny fused f32 passes) ---------------
    # Computed from the padded operands so XLA fuses pad + reduce; zero pads
    # are exact for sum-of-squares, and zero rows/cols clamp to rsqrt(1e-24)
    # but contribute 0 to the (later sliced-off) output.
    inv_x = None
    if f_norm:
        xss = jnp.sum(xp.astype(jnp.float32) ** 2, axis=1, keepdims=True)
        inv_x = lax.rsqrt(jnp.maximum(xss, 1e-24))            # (Mp, 1) f32
    inv_w = None
    if w_norm:
        wss = jnp.sum(wp.astype(jnp.float32) ** 2, axis=1)
        inv_w = lax.rsqrt(jnp.maximum(wss, 1e-24)).reshape(1, Np)  # (1, Np) f32

    if mm_dtype is not None:
        xp = xp.astype(mm_dtype)
        wp = wp.astype(mm_dtype)

    # ---- Shape-aware grid ordering -------------------------------------------
    # Put the larger operand on the outer parallel axis (read once when K fits
    # a single tile); keep a >1-tile axis leading for v7x megacore sharding.
    x_bytes = Mp * Kp * x_item
    w_bytes = Np * Kp * w_item
    m_outer = x_bytes >= w_bytes
    if m_outer and m_tiles == 1 and n_tiles > 1:
        m_outer = False
    elif (not m_outer) and n_tiles == 1 and m_tiles > 1:
        m_outer = True

    if m_outer:
        grid = (m_tiles, n_tiles, k_tiles)
        x_map = lambda i, j, k: (i, k)
        w_map = lambda i, j, k: (j, k)
        row_map = lambda i, j, k: (i, 0)
        col_map = lambda i, j, k: (0, j)
        out_map = lambda i, j, k: (i, j)
    else:
        grid = (n_tiles, m_tiles, k_tiles)
        x_map = lambda j, i, k: (i, k)
        w_map = lambda j, i, k: (j, k)
        row_map = lambda j, i, k: (i, 0)
        col_map = lambda j, i, k: (0, j)
        out_map = lambda j, i, k: (i, j)

    # ---- Inputs / specs ------------------------------------------------------
    inputs = [xp, wp]
    in_specs = [
        pl.BlockSpec((tm, tk), x_map),   # x
        pl.BlockSpec((tn, tk), w_map),   # W (native (out, in) layout)
    ]
    if f_norm:
        inputs.append(inv_x)
        in_specs.append(pl.BlockSpec((tm, 1), row_map))
    if w_norm:
        inputs.append(inv_w)
        in_specs.append(pl.BlockSpec((1, tn), col_map))
    if has_bias:
        b2 = bias.reshape(1, N)
        if Np != N:
            b2 = jnp.pad(b2, ((0, 0), (0, Np - N)))
        inputs.append(b2)
        in_specs.append(pl.BlockSpec((1, tn), col_map))

    kernel = functools.partial(
        _norm_linear_kernel,
        f_norm=f_norm, w_norm=w_norm, has_bias=has_bias, single_k=single_k)

    scratch_shapes = [] if single_k else [pltpu.VMEM((tm, tn), jnp.float32)]

    fp = _footprint(tm, tn, tk)
    vmem_limit = min(budget, max(fp + (4 << 20), 32 << 20))

    flops = 2 * Mp * Np * Kp
    bytes_accessed = (Mp * Kp * x_item * n_tiles        # x re-streamed per N tile
                      + Np * Kp * w_item * m_tiles      # W re-streamed per M tile
                      + Mp * Np * out_item
                      + (Mp * 4 if f_norm else 0)
                      + (Np * 4 if w_norm else 0)
                      + (Np * out_item if has_bias else 0))

    out = pl.pallas_call(
        kernel,
        out_shape=jax.ShapeDtypeStruct((Mp, Np), x.dtype),
        grid_spec=pltpu.PrefetchScalarGridSpec(
            num_scalar_prefetch=0,
            grid=grid,
            in_specs=in_specs,
            out_specs=pl.BlockSpec((tm, tn), out_map),
            scratch_shapes=scratch_shapes,
        ),
        compiler_params=pltpu.CompilerParams(
            dimension_semantics=("parallel", "parallel", "arbitrary"),
            vmem_limit_bytes=int(vmem_limit),
        ),
        cost_estimate=pl.CostEstimate(
            flops=int(flops), transcendentals=0,
            bytes_accessed=int(bytes_accessed)),
    )(*inputs)

    if (Mp, Np) != (B, N):
        out = out[:B, :N]
    return out


def _reference(x, weight, bias, *, F_norm, W_norm):
    xf = x.astype(jnp.float32)
    wf = weight.astype(jnp.float32)
    if F_norm:
        xf = xf / jnp.maximum(jnp.linalg.norm(xf, axis=1, keepdims=True), 1e-12)
    if W_norm:
        wf = wf / jnp.maximum(jnp.linalg.norm(wf, axis=1, keepdims=True), 1e-12)
    y = xf @ wf.T
    if bias is not None:
        y = y + bias.astype(jnp.float32)
    return y.astype(x.dtype)


def _make_params(key, in_features, out_features, batch):
    # Mirrors Norm_Linear.reset_parameters: uniform(-stdv, stdv), stdv=1/sqrt(in).
    stdv = 1.0 / math.sqrt(in_features)
    k_w, k_b, k_x = jax.random.split(key, 3)
    weight = jax.random.uniform(
        k_w, (out_features, in_features), jnp.float32, minval=-stdv, maxval=stdv)
    bias = jax.random.uniform(
        k_b, (out_features,), jnp.float32, minval=-stdv, maxval=stdv)
    x = jax.random.normal(k_x, (batch, in_features), jnp.float32)
    return x, weight, bias


if __name__ == "__main__":
    key = jax.random.PRNGKey(0)
    k1, k2, k3 = jax.random.split(key, 3)
    ok = True

    # Config 1: module-native small shape (single tile after padding),
    # all four F_norm/W_norm combinations.
    x1, w1, b1 = _make_params(k1, in_features=32, out_features=16, batch=8)
    for F_norm in (True, False):
        for W_norm in (True, False):
            out = norm_linear(x1, w1, b1, F_norm=F_norm, W_norm=W_norm,
                              W_softp=False, is_detach=True)
            out = jax.block_until_ready(out)
            ref = _reference(x1, w1, b1, F_norm=F_norm, W_norm=W_norm)
            ok &= bool(jnp.allclose(out, ref, atol=2e-4, rtol=2e-4))

    # Config 2: multi-tile grid (M/N/K tiling, K accumulation, N/K padding)
    # plus the no-bias path; W is larger than x -> N-outer grid ordering.
    x2, w2, b2 = _make_params(k2, in_features=200, out_features=160, batch=24)
    for bias2 in (b2, None):
        out = norm_linear(x2, w2, bias2, F_norm=True, W_norm=True,
                          W_softp=False, is_detach=False,
                          block_m=8, block_n=128, block_k=128)
        out = jax.block_until_ready(out)
        ref = _reference(x2, w2, bias2, F_norm=True, W_norm=True)
        ok &= bool(jnp.allclose(out, ref, atol=2e-4, rtol=2e-4))

    # Config 3: batch >> out_features -> M-outer grid ordering, single K tile
    # (no accumulator scratch path).
    x3, w3, b3 = _make_params(k3, in_features=64, out_features=32, batch=256)
    out = norm_linear(x3, w3, b3, F_norm=True, W_norm=True,
                      W_softp=False, is_detach=True,
                      block_m=64, block_n=128, block_k=128)
    out = jax.block_until_ready(out)
    ref = _reference(x3, w3, b3, F_norm=True, W_norm=True)
    ok &= bool(jnp.allclose(out, ref, atol=2e-4, rtol=2e-4))

    print("KERNEL_OK" if ok else "KERNEL_MISMATCH")
</pallas_src>

<mosaic_0001>
module attributes {stable_mosaic.version = 11 : i64} {
  func.func @_norm_linear_kernel(%arg0: i32, %arg1: i32, %arg2: i32, %arg3: memref<8x128xf32, #tpu.memory_space<vmem>>, %arg4: memref<128x128xf32, #tpu.memory_space<vmem>>, %arg5: memref<8x1xf32, #tpu.memory_space<vmem>>, %arg6: memref<1x128xf32, #tpu.memory_space<vmem>>, %arg7: memref<1x128xf32, #tpu.memory_space<vmem>>, %arg8: memref<8x128xf32, #tpu.memory_space<vmem>>) attributes {dimension_semantics = [#tpu.dimension_semantics<parallel>, #tpu.dimension_semantics<parallel>, #tpu.dimension_semantics<arbitrary>], iteration_bounds = array<i64: 1, 1, 1>, scalar_prefetch = 0 : i64, scratch_operands = 0 : i64, tpu.core_type = #tpu.core_type<tc>, window_params = [{transform_indices = @transform_0, window_bounds = array<i64: 8, 128>}, {transform_indices = @transform_1, window_bounds = array<i64: 128, 128>}, {transform_indices = @transform_2, window_bounds = array<i64: 8, 1>}, {transform_indices = @transform_3, window_bounds = array<i64: 1, 128>}, {transform_indices = @transform_4, window_bounds = array<i64: 1, 128>}, {transform_indices = @transform_5, window_bounds = array<i64: 8, 128>}]} {
    %c0 = arith.constant 0 : index
    %c0_0 = arith.constant 0 : index
    %0 = vector.load %arg3[%c0, %c0_0] : memref<8x128xf32, #tpu.memory_space<vmem>>, vector<8x128xf32>
    %c0_1 = arith.constant 0 : index
    %c0_2 = arith.constant 0 : index
    %1 = vector.load %arg4[%c0_1, %c0_2] : memref<128x128xf32, #tpu.memory_space<vmem>>, vector<128x128xf32>
    %cst = arith.constant dense<0.000000e+00> : vector<8x128xf32>
    %2 = tpu.matmul %0, %1, %cst {dimension_numbers = #tpu.dot_dimension_numbers<[1], [1], [0], [0], [0, 0, 1, 0], [], []>} : vector<8x128xf32>, vector<128x128xf32>, vector<8x128xf32> -> vector<8x128xf32>
    %c0_3 = arith.constant 0 : index
    %c0_4 = arith.constant 0 : index
    %3 = vector.load %arg5[%c0_3, %c0_4] : memref<8x1xf32, #tpu.memory_space<vmem>>, vector<8x1xf32>
    %4 = vector.broadcast %3 : vector<8x1xf32> to vector<8x128xf32>
    %5 = arith.mulf %2, %4 : vector<8x128xf32>
    %c0_5 = arith.constant 0 : index
    %c0_6 = arith.constant 0 : index
    %6 = vector.load %arg6[%c0_5, %c0_6] : memref<1x128xf32, #tpu.memory_space<vmem>>, vector<1x128xf32>
    %7 = vector.broadcast %6 : vector<1x128xf32> to vector<8x128xf32>
    %8 = arith.mulf %5, %7 : vector<8x128xf32>
    %c0_7 = arith.constant 0 : index
    %c0_8 = arith.constant 0 : index
    %9 = vector.load %arg7[%c0_7, %c0_8] : memref<1x128xf32, #tpu.memory_space<vmem>>, vector<1x128xf32>
    %10 = vector.broadcast %9 : vector<1x128xf32> to vector<8x128xf32>
    %11 = arith.addf %8, %10 : vector<8x128xf32>
    %c0_9 = arith.constant 0 : index
    %c0_10 = arith.constant 0 : index
    %12 = vector.load %arg8[%c0_9, %c0_10] : memref<8x128xf32, #tpu.memory_space<vmem>>, vector<8x128xf32>
    tpu.vector_store %arg8[%c0_9, %c0_10], %11 {strides = array<i32>} : memref<8x128xf32, #tpu.memory_space<vmem>>, vector<8x128xf32>,
    return
  }
  func.func @transform_0(%arg0: i32, %arg1: i32, %arg2: i32) -> (i32, i32) {
    %c0_i32 = arith.constant 0 : i32
    return %arg1, %arg2 : i32, i32
  }
  func.func @transform_1(%arg0: i32, %arg1: i32, %arg2: i32) -> (i32, i32) {
    %c0_i32 = arith.constant 0 : i32
    return %arg0, %arg2 : i32, i32
  }
  func.func @transform_2(%arg0: i32, %arg1: i32, %arg2: i32) -> (i32, i32) {
    %c0_i32 = arith.constant 0 : i32
    %c0_i32_0 = arith.constant 0 : i32
    return %arg1, %c0_i32 : i32, i32
  }
  func.func @transform_3(%arg0: i32, %arg1: i32, %arg2: i32) -> (i32, i32) {
    %c0_i32 = arith.constant 0 : i32
    %c0_i32_0 = arith.constant 0 : i32
    return %c0_i32, %arg0 : i32, i32
  }
  func.func @transform_4(%arg0: i32, %arg1: i32, %arg2: i32) -> (i32, i32) {
    %c0_i32 = arith.constant 0 : i32
    %c0_i32_0 = arith.constant 0 : i32
    return %c0_i32, %arg0 : i32, i32
  }
  func.func @transform_5(%arg0: i32, %arg1: i32, %arg2: i32) -> (i32, i32) {
    %c0_i32 = arith.constant 0 : i32
    return %arg1, %arg0 : i32, i32
  }
}

</mosaic_0001>

<bundles_post_ra>
// kernel: tpu_custom_call.1
= control target key start
LH: loop header
LB: loop body
LE: loop exit
PB: predicated region body
PF: predicated region fallthrough
CT: control target
= control target key end

     0   :  { %10 = vsyncpa [#allocation3], 0  ;;  %s222_s0 = inlined_call_operand.vmem [shape: f32[8,128], index: 0, kind: input, shape index: {}]   ;;  %s223_s1 = inlined_call_operand.hbm [shape: f32[128,128], index: 1, kind: input, shape index: {}]   ;;  %s224_s2 = inlined_call_operand.vmem [shape: f32[8,1], index: 2, kind: input, shape index: {}]   ;;  %s225_s3 = inlined_call_operand.vmem [shape: f32[1,128], index: 3, kind: input, shape index: {}]   ;;  %s226_s4 = inlined_call_operand.vmem [shape: f32[1,128], index: 4, kind: input, shape index: {}]   ;;  %s227_s5 = inlined_call_operand.hbm [shape: f32[8,128], index: 5, kind: output, shape index: {}]  }
   0x1   :  { %11 = vsyncpa [#allocation4], 0  ;;  %s18_s20 = sshll.u32 %s223_s1, 4  ;;  %s169_s21 = smov [#allocation2]   ;;  %s19_s20 = int_to_ptr.hbm [resolvable:$true] %s18_s20 }
   0x2   :  { %s20_s22 = sshll.u32 %s169_s21, 4  ;;  %s170_s23 = smov 128   ;;  %s21_s22 = int_to_ptr.vmem [resolvable:$true] %s20_s22 }
   0x3   :  { %s171_s24 = smov 8  }
   0x4   :  { %26 = dma.hbm_to_vmem [thread:$0]  %s19_s20, 2048, %s21_s22, [#allocation3], %s170_s23, %s170_s23, %s171_s24  }
   0x5   :  { %165 = dma.done.wait [#allocation3], 2048  }
   0x6   :  { %166 = vsyncadd [#allocation3], 4294965248  ;;  %v53_v0 = vld [vmem:[#allocation2 + $0x78] sm:$0xff]  ;;  %v52_v1 = vld [vmem:[#allocation2 + $0x70] sm:$0xff]  ;;  %v172_v10 = vmov 0   ;;  %s173_s6 = smov [#allocation5]  }
   0x7   :  { %54 = vmatpush.xpose.msra.mxu0 %v53_v0  ;;  %v51_v2 = vld [vmem:[#allocation2 + $0x68] sm:$0xff]  ;;  %v50_v3 = vld [vmem:[#allocation2 + $0x60] sm:$0xff]  ;;  %v49_v4 = vld [vmem:[#allocation2 + $0x58] sm:$0xff]  ;;  %114 = vset.pattern.permute.xlu0 %v172_v10  ;;  %s97_s7 = sshll.u32 %s173_s6, 4  ;;  %s99_s10 = sshll.u32 %s227_s5, 4  ;;  %s98_s7 = int_to_ptr.vmem [resolvable:$true] %s97_s7  ;;  %s100_s10 = int_to_ptr.hbm [resolvable:$true] %s99_s10 }
   0x8   :  { %v48_v5 = vld [vmem:[#allocation2 + $0x50] sm:$0xff]  ;;  %v47_v6 = vld [vmem:[#allocation2 + $0x48] sm:$0xff]  ;;  %v46_v7 = vld [vmem:[#allocation2 + $0x40] sm:$0xff] }
   0x9   :  { %v45_v8 = vld [vmem:[#allocation2 + $0x38] sm:$0xff]  ;;  %v74_v9 = vld [vmem:[%s224_s2] sm:$0xff]  ;;  %v44_v11 = vld [vmem:[#allocation2 + $0x30] sm:$0xff] }
   0xa   :  { %77 = vperm.xlu0 %114, %v74_v9   ;;  %v43_v12 = vld [vmem:[#allocation2 + $0x28] sm:$0xff]  ;;  %v42_v13 = vld [vmem:[#allocation2 + $0x20] sm:$0xff]  ;;  %v41_v14 = vld [vmem:[#allocation2 + $0x18] sm:$0xff] }
   0xb   :  { %55 = vmatpush.xpose.msra.mxu0 %v52_v1  ;;  %v40_v15 = vld [vmem:[#allocation2 + $0x10] sm:$0xff]  ;;  %v39_v16 = vld [vmem:[#allocation2 + $0x8] sm:$0xff]  ;;  %v38_v17 = vld [vmem:[#allocation2] sm:$0xff] }
   0xc   :  { %v37_v18 = vld [vmem:[%s222_s0] sm:$0xff] }
   0xd   :  { %v115_v20 = vld [vmem:[%s225_s3] ss:$0 sm:$0xff] }
   0xe   :  { %v116_v23 = vld [vmem:[%s226_s4] ss:$0 sm:$0xff] }
   0xf   :  { %56 = vmatpush.xpose.msra.mxu0 %v51_v2 }
  0x13   :  { %57 = vmatpush.xpose.msra.mxu0 %v50_v3 }
  0x17   :  { %58 = vmatpush.xpose.msra.mxu0 %v49_v4 }
  0x1b   :  { %59 = vmatpush.xpose.msra.mxu0 %v48_v5 }
  0x1f   :  { %60 = vmatpush.xpose.msra.mxu0 %v47_v6 }
  0x23   :  { %61 = vmatpush.xpose.msra.mxu0 %v46_v7 }
  0x27   :  { %62 = vmatpush.xpose.msra.mxu0 %v45_v8 }
  0x2b   :  { %63 = vmatpush.xpose.msra.mxu0 %v44_v11 }
  0x2f   :  { %64 = vmatpush.xpose.msra.mxu0 %v43_v12 }
  0x33   :  { %65 = vmatpush.xpose.msra.mxu0 %v42_v13 }
  0x37   :  { %66 = vmatpush.xpose.msra.mxu0 %v41_v14 }
  0x3b   :  { %67 = vmatpush.xpose.msra.mxu0 %v40_v15 }
  0x3f   :  { %68 = vmatpush.xpose.msra.mxu0 %v39_v16 }
  0x43   :  { %69 = vmatpush.xpose.msra.mxu0 %v38_v17 }
  0x46   :  { %70 = vmatmul.f32.vlgmr.msra.gmra.mxu0 %v37_v18 }
  0x7c   :  { %v78_v19 = vpop.permute.xlu0 %77 }
  0xc3   :  { %v71_v21 = vpop.f32.mrf.mxu0 }
  0xc4   :  { %v80_v22 = vmul.f32 %v78_v19, %v71_v21 }
  0xc6   :  { %v85_v24 = vmul.f32 %v115_v20, %v80_v22 }
  0xc8   :  { %v90_v25 = vadd.f32 %v116_v23, %v85_v24 }
  0xca   :  { %91 = vst [vmem:[#allocation5] sm:$0xff] %v90_v25 }
  0xcb   :  { %102 = dma.vmem_to_hbm [thread:$0]  %s98_s7, 128, %s100_s10, [#allocation4]  }
  0xcc   :  { %167 = dma.done.wait [#allocation4], 128  }
  0xcd   :  { %168 = vsyncadd [#allocation4], 4294967168 }
  0xce   :  { %107 = vsyncpa [#allocation3], 1 }
  0xcf   :  { %108 = vsyncpa [#allocation4], 1 }

</bundles_post_ra>
